<compile_context>
chip_gen: v6e
topology: v6e:2x2x1
jax: 0.10.0
libtpu: 0.0.40
codegen_flags: <defaults>
</compile_context>

<pallas_src>
import jax
import jax.numpy as jnp
from jax import lax
from jax.experimental import pallas as pl
from jax.experimental.pallas import tpu as pltpu

LN_EPS = 1e-5
_TM_DEFAULT = 512      # row tile for the flattened (B*T) axis; sweep 512-1024
_MIB = 1024 * 1024


def _round_up(n, m):
    return ((n + m - 1) // m) * m


def _pick_row_tile(M):
    """Row tile: big blocks when M is large; >=2 grid steps when M is small."""
    if M > _TM_DEFAULT:
        return _TM_DEFAULT
    # Split small M into at least two sublane-legal (multiple-of-8) blocks so
    # v7x's two TensorCores both get work; fall back to one full block when
    # that is impossible (M <= 8).
    tm = max(8, _round_up((M + 1) // 2, 8))
    return tm if tm < M else M


def _vmem_limit_bytes(TM, D, O):
    """Explicit VMEM budget: double-buffered x/out tiles + resident params +
    materialized f32 temporaries, with 2x headroom, clamped to [32, 48] MiB
    (48 MiB keeps comfortable slack inside v7x's 64 MiB/TC)."""
    est = 4 * (2 * TM * D + 2 * TM * O + D * O + 4 * TM * D)
    return int(min(48 * _MIB, max(32 * _MIB, 2 * est)))


def _ln_linear_kernel(x_ref, gamma_ref, beta_ref, w_ref, bias_ref, o_ref):
    # x_ref:     (TM, D)   row tile of flattened tokens
    # gamma_ref: (1, D)    LayerNorm scale
    # beta_ref:  (1, D)    LayerNorm shift
    # w_ref:     (D, O)    linear weight (transposed vs torch layout)
    # bias_ref:  (1, O)    linear bias
    # o_ref:     (TM, O)
    x = x_ref[...].astype(jnp.float32)                      # (TM, D)

    # LayerNorm over the last dim, centered two-pass variance (matches torch,
    # non-negative by construction -> no NaN from rsqrt under cancellation).
    mean = jnp.mean(x, axis=-1, keepdims=True)              # (TM, 1)
    xc = x - mean
    var = jnp.mean(xc * xc, axis=-1, keepdims=True)         # (TM, 1), >= 0
    xn = xc * lax.rsqrt(var + LN_EPS)                       # rsqrt -> EUP
    y = xn * gamma_ref[...] + beta_ref[...]                 # (TM, D)

    # Linear projection on the MXU, f32 accumulation, f32 operands (layer is
    # DMA-bound; see header note about the optional bf16-operand variant).
    out = jnp.dot(y, w_ref[...], preferred_element_type=jnp.float32)
    o_ref[...] = (out + bias_ref[...]).astype(o_ref.dtype)  # (TM, O)


@jax.jit
def output_layer(x, gamma, beta, w_t, bias):
    """DiT OutputLayer forward.

    x     : (B, T, D) activations
    gamma : (D,)      LayerNorm weight
    beta  : (D,)      LayerNorm bias
    w_t   : (D, O)    Linear weight stored transposed (torch weight is (O, D))
    bias  : (O,)      Linear bias
    returns (B, T-2, O)
    """
    B, T, D = x.shape
    O = w_t.shape[1]

    # Flatten (B, T) -> M rows.  LayerNorm + Linear are row-wise, so the two
    # tokens that get dropped are simply processed too (negligible extra work)
    # and sliced off the much smaller output.  The reshape is a free row-major
    # collapse — no extra HBM pass over x.
    M = B * T
    x2 = x.reshape(M, D)

    TM = _pick_row_tile(M)
    grid = (pl.cdiv(M, TM),)

    # Params (gamma/beta/W/bias) use constant index_maps, so they stay VMEM
    # resident across the grid and are not re-DMA'd per step.
    grid_spec = pltpu.PrefetchScalarGridSpec(
        num_scalar_prefetch=0,
        grid=grid,
        in_specs=[
            pl.BlockSpec((TM, D), lambda m: (m, 0)),        # x row tile
            pl.BlockSpec((1, D), lambda m: (0, 0)),         # gamma
            pl.BlockSpec((1, D), lambda m: (0, 0)),         # beta
            pl.BlockSpec((D, O), lambda m: (0, 0)),         # weight (D, O)
            pl.BlockSpec((1, O), lambda m: (0, 0)),         # bias
        ],
        out_specs=pl.BlockSpec((TM, O), lambda m: (m, 0)),
    )

    cost = pl.CostEstimate(
        flops=2 * M * D * O + 8 * M * D,                    # matmul + LN
        transcendentals=M,                                   # rsqrt per row
        bytes_accessed=4 * (M * D + M * O + D * O + 2 * D + O),
    )

    out = pl.pallas_call(
        _ln_linear_kernel,
        out_shape=jax.ShapeDtypeStruct((M, O), x.dtype),
        grid_spec=grid_spec,
        compiler_params=pltpu.CompilerParams(
            dimension_semantics=("parallel",),
            vmem_limit_bytes=_vmem_limit_bytes(TM, D, O),
        ),
        cost_estimate=cost,
    )(x2, gamma.reshape(1, D), beta.reshape(1, D), w_t, bias.reshape(1, O))

    # Drop the timestep + label tokens on the small (M, O) output.  At real
    # DiT dims (D=1152, O=32-48) this touches ~3% of the bytes the kernel
    # moves; dropping it entirely would require the consumer to accept a
    # (B, T, O) slab, which would break the module's output contract.
    return out.reshape(B, T, O)[:, 2:, :]


def _reference(x, gamma, beta, w_t, bias):
    mean = jnp.mean(x, axis=-1, keepdims=True)
    var = jnp.mean((x - mean) ** 2, axis=-1, keepdims=True)
    xn = (x - mean) / jnp.sqrt(var + LN_EPS)
    y = xn * gamma + beta
    y = y[:, 2:, :]
    return y @ w_t + bias


if __name__ == "__main__":
    # Small shapes consistent with the module:
    #   batch B=2, total tokens T=10 (2 special + 8 patches), n_embd=32,
    #   patch_size=4, out_channels=3 -> output dim O = 4*4*3 = 48.
    B, T, D = 2, 10, 32
    patch_size, out_channels = 4, 3
    O = patch_size * patch_size * out_channels

    key = jax.random.PRNGKey(0)
    kx, kw, kb = jax.random.split(key, 3)

    x = jax.random.normal(kx, (B, T, D), dtype=jnp.float32)

    # nn.Linear-style uniform(-1/sqrt(D), 1/sqrt(D)); LayerNorm defaults.
    bound = 1.0 / (D ** 0.5)
    w_t = jax.random.uniform(kw, (D, O), minval=-bound, maxval=bound,
                             dtype=jnp.float32)   # stored as (in, out)
    bias = jax.random.uniform(kb, (O,), minval=-bound, maxval=bound,
                              dtype=jnp.float32)
    gamma = jnp.ones((D,), dtype=jnp.float32)
    beta = jnp.zeros((D,), dtype=jnp.float32)

    out = output_layer(x, gamma, beta, w_t, bias)
    out = jax.block_until_ready(out)

    ref = _reference(x, gamma, beta, w_t, bias)
    assert out.shape == (B, T - 2, O), out.shape
    assert jnp.allclose(out, ref, atol=1e-4, rtol=1e-4), "mismatch vs reference"

    print("KERNEL_OK")
</pallas_src>

<mosaic_0001>
module attributes {stable_mosaic.version = 11 : i64} {
  func.func @_ln_linear_kernel(%arg0: i32, %arg1: memref<16x32xf32, #tpu.memory_space<vmem>>, %arg2: memref<1x32xf32, #tpu.memory_space<vmem>>, %arg3: memref<1x32xf32, #tpu.memory_space<vmem>>, %arg4: memref<32x48xf32, #tpu.memory_space<vmem>>, %arg5: memref<1x48xf32, #tpu.memory_space<vmem>>, %arg6: memref<16x48xf32, #tpu.memory_space<vmem>>) attributes {dimension_semantics = [#tpu.dimension_semantics<parallel>], iteration_bounds = array<i64: 2>, scalar_prefetch = 0 : i64, scratch_operands = 0 : i64, tpu.core_type = #tpu.core_type<tc>, window_params = [{transform_indices = @transform_0, window_bounds = array<i64: 16, 32>}, {pipeline_mode = #tpu.pipeline_mode<synchronous>, transform_indices = @transform_1, window_bounds = array<i64: 1, 32>}, {pipeline_mode = #tpu.pipeline_mode<synchronous>, transform_indices = @transform_2, window_bounds = array<i64: 1, 32>}, {pipeline_mode = #tpu.pipeline_mode<synchronous>, transform_indices = @transform_3, window_bounds = array<i64: 32, 48>}, {pipeline_mode = #tpu.pipeline_mode<synchronous>, transform_indices = @transform_4, window_bounds = array<i64: 1, 48>}, {transform_indices = @transform_5, window_bounds = array<i64: 16, 48>}]} {
    %c0 = arith.constant 0 : index
    %c0_0 = arith.constant 0 : index
    %0 = vector.load %arg1[%c0, %c0_0] : memref<16x32xf32, #tpu.memory_space<vmem>>, vector<16x32xf32>
    %cst = arith.constant dense<0.000000e+00> : vector<16xf32>
    %1 = vector.multi_reduction <add>, %0, %cst [1] : vector<16x32xf32> to vector<16xf32>
    %2 = vector.shape_cast %1 : vector<16xf32> to vector<16x1xf32>
    %cst_1 = arith.constant 3.200000e+01 : f32
    %3 = vector.broadcast %cst_1 : f32 to vector<16x1xf32>
    %4 = arith.divf %2, %3 : vector<16x1xf32>
    %5 = vector.broadcast %4 : vector<16x1xf32> to vector<16x32xf32>
    %6 = arith.subf %0, %5 : vector<16x32xf32>
    %7 = arith.mulf %6, %6 : vector<16x32xf32>
    %cst_2 = arith.constant dense<0.000000e+00> : vector<16xf32>
    %8 = vector.multi_reduction <add>, %7, %cst_2 [1] : vector<16x32xf32> to vector<16xf32>
    %9 = vector.shape_cast %8 : vector<16xf32> to vector<16x1xf32>
    %cst_3 = arith.constant 3.200000e+01 : f32
    %10 = vector.broadcast %cst_3 : f32 to vector<16x1xf32>
    %11 = arith.divf %9, %10 : vector<16x1xf32>
    %cst_4 = arith.constant 9.99999974E-6 : f32
    %12 = vector.broadcast %cst_4 : f32 to vector<16x1xf32>
    %13 = arith.addf %11, %12 : vector<16x1xf32>
    %14 = math.rsqrt %13 : vector<16x1xf32>
    %15 = vector.broadcast %14 : vector<16x1xf32> to vector<16x32xf32>
    %16 = arith.mulf %6, %15 : vector<16x32xf32>
    %c0_5 = arith.constant 0 : index
    %c0_6 = arith.constant 0 : index
    %17 = vector.load %arg2[%c0_5, %c0_6] : memref<1x32xf32, #tpu.memory_space<vmem>>, vector<1x32xf32>
    %18 = vector.broadcast %17 : vector<1x32xf32> to vector<16x32xf32>
    %19 = arith.mulf %16, %18 : vector<16x32xf32>
    %c0_7 = arith.constant 0 : index
    %c0_8 = arith.constant 0 : index
    %20 = vector.load %arg3[%c0_7, %c0_8] : memref<1x32xf32, #tpu.memory_space<vmem>>, vector<1x32xf32>
    %21 = vector.broadcast %20 : vector<1x32xf32> to vector<16x32xf32>
    %22 = arith.addf %19, %21 : vector<16x32xf32>
    %c0_9 = arith.constant 0 : index
    %c0_10 = arith.constant 0 : index
    %23 = vector.load %arg4[%c0_9, %c0_10] : memref<32x48xf32, #tpu.memory_space<vmem>>, vector<32x48xf32>
    %cst_11 = arith.constant dense<0.000000e+00> : vector<16x48xf32>
    %24 = tpu.matmul %22, %23, %cst_11 {dimension_numbers = #tpu.dot_dimension_numbers<[1], [0], [0], [1], [0, 0, 1, 1], [], []>} : vector<16x32xf32>, vector<32x48xf32>, vector<16x48xf32> -> vector<16x48xf32>
    %c0_12 = arith.constant 0 : index
    %c0_13 = arith.constant 0 : index
    %25 = vector.load %arg5[%c0_12, %c0_13] : memref<1x48xf32, #tpu.memory_space<vmem>>, vector<1x48xf32>
    %26 = vector.broadcast %25 : vector<1x48xf32> to vector<16x48xf32>
    %27 = arith.addf %24, %26 : vector<16x48xf32>
    %c0_14 = arith.constant 0 : index
    %c0_15 = arith.constant 0 : index
    %28 = vector.load %arg6[%c0_14, %c0_15] : memref<16x48xf32, #tpu.memory_space<vmem>>, vector<16x48xf32>
    tpu.vector_store %arg6[%c0_14, %c0_15], %27 {strides = array<i32>} : memref<16x48xf32, #tpu.memory_space<vmem>>, vector<16x48xf32>,
    return
  }
  func.func @transform_0(%arg0: i32) -> (i32, i32) {
    %c0_i32 = arith.constant 0 : i32
    %c0_i32_0 = arith.constant 0 : i32
    return %arg0, %c0_i32 : i32, i32
  }
  func.func @transform_1(%arg0: i32) -> (i32, i32) {
    %c0_i32 = arith.constant 0 : i32
    %c0_i32_0 = arith.constant 0 : i32
    %c0_i32_1 = arith.constant 0 : i32
    return %c0_i32, %c0_i32_0 : i32, i32
  }
  func.func @transform_2(%arg0: i32) -> (i32, i32) {
    %c0_i32 = arith.constant 0 : i32
    %c0_i32_0 = arith.constant 0 : i32
    %c0_i32_1 = arith.constant 0 : i32
    return %c0_i32, %c0_i32_0 : i32, i32
  }
  func.func @transform_3(%arg0: i32) -> (i32, i32) {
    %c0_i32 = arith.constant 0 : i32
    %c0_i32_0 = arith.constant 0 : i32
    %c0_i32_1 = arith.constant 0 : i32
    return %c0_i32, %c0_i32_0 : i32, i32
  }
  func.func @transform_4(%arg0: i32) -> (i32, i32) {
    %c0_i32 = arith.constant 0 : i32
    %c0_i32_0 = arith.constant 0 : i32
    %c0_i32_1 = arith.constant 0 : i32
    return %c0_i32, %c0_i32_0 : i32, i32
  }
  func.func @transform_5(%arg0: i32) -> (i32, i32) {
    %c0_i32 = arith.constant 0 : i32
    %c0_i32_0 = arith.constant 0 : i32
    return %arg0, %c0_i32 : i32, i32
  }
}

</mosaic_0001>

<bundles_post_ra>
// kernel: output_layer.1
= control target key start
LH: loop header
LB: loop body
LE: loop exit
PB: predicated region body
PF: predicated region fallthrough
CT: control target
= control target key end

     0   :  { %s868_s18 = smov 0   ;;  %s870_s19 = smov 0   ;;  %s978_s0 = inlined_call_operand.vmem [shape: f32[20,32], index: 0, kind: input, shape index: {}]   ;;  %s979_s1 = inlined_call_operand.vmem [shape: f32[1,32], index: 1, kind: input, shape index: {}]   ;;  %s980_s2 = inlined_call_operand.vmem [shape: f32[1,32], index: 2, kind: input, shape index: {}]   ;;  %s981_s3 = inlined_call_operand.vmem [shape: f32[32,48], index: 3, kind: input, shape index: {}]   ;;  %s982_s4 = inlined_call_operand.vmem [shape: f32[1,48], index: 4, kind: input, shape index: {}]   ;;  %s983_s5 = inlined_call_operand.vmem [shape: f32[20,48], index: 5, kind: output, shape index: {}]  }
   0x1   :  { %s872_s20 = smov 0  }
   0x2 LB: > { %s881_s21 = sadd.s32 4294967295, %s804_s20   ;;  %s883_s22 = sadd.s32 1, %s804_s20   ;;  %s804_s20 = sphi %s872_s20, %s987_s20   ;;  %s800_s19 = sphi %s870_s19, %s986_s19   ;;  %s796_s18 = sphi %s868_s18, %s985_s18  }
   0x3   : > { %s129_s23 = ssub.s32 %s804_s20, %s883_s22  ;;  %s132_s24 = sadd.s32 1, %s800_s19 }
   0x4   : > { %p130_p0 = scmp.eq.s32.totalorder %s129_s23, 0  ;;  %p142_p1 = scmp.ne.s32.totalorder %s800_s19, %s796_s18 }
   0x5   : > { %p143_p2 = scmp.eq.s32.totalorder %s881_s21, 1  ;;  %p612_p3 = scmp.ge.s32.totalorder %s804_s20, 1 }
   0x6   : > { %s891_s25 = scalar_select %p130_p0, %s800_s19, %s132_s24  }
   0x7   : > { %p893_p4 = por %p143_p2, %p142_p1  ;;  %p196_p5 = scmp.lt.s32.totalorder %s804_s20, 3 }
   0x9   : > { %p197_p6 = pnand %p612_p3, %p196_p5 }
   0xa   : > { %s898_s27 = sshll.u32 (!%p197_p6), %s881_s21, 1  ;;  %s224_s24 = sand.u32 (!%p197_p6), 1, %s796_s18  }
   0xb   : > { %200 = sbr.rel (%p197_p6) target bundleno = 570 (0x23a), region = 40  ;;  %p232_p7 = scmp.lt.s32.totalorder (!%p197_p6), %s898_s27, 2 }
  0x10   : > { %s233_s28 = scalar_select %p232_p7, %s898_s27, 2  ;;  %vm248_vm0 = vcmask 261120   ;;  %v297_v14 = vld [vmem:[%s981_s3 + $0x18] sm:$0xff]  ;;  %v296_v15 = vld [vmem:[%s981_s3 + $0x10] sm:$0xff]  ;;  %v295_v16 = vld [vmem:[%s981_s3 + $0x8] sm:$0xff]  ;;  %vm386_vm1 = vcmask 392192  }
  0x11   : > { %647 = vmatprep.subr.mxu0 %v297_v14  ;;  %v294_v17 = vld [vmem:[%s981_s3] sm:$0xff]  ;;  %s397_s18 = ssub.s32 (%p893_p4), 3, %s898_s27 }
  0x12   : > { %s615_s29 = sshll.u32 %s233_s28, 3  ;;  %648 = vmatpush3.msra.mxu0 %v297_v14  ;;  %v616_v25 = vld [vmem:[%s979_s1] ss:$0 sm:$0xff]  ;;  %s613_s28 = sshll.u32 %s224_s24, 4 }
  0x13   : > { %s235_s7 = scalar_lea.vmem %s978_s0, %s615_s29  ;;  %649 = vmatprep.subr.mxu0 %v296_v15  ;;  %v617_v27 = vld [vmem:[%s980_s2] ss:$0 sm:$0xff]  ;;  %s933_s6 = scalar_lea.vmem [#allocation2], %s613_s28  }
  0x14   : > { %v246_v0 = vld [vmem:[%s235_s7] sm:$0xff]  ;;  %v247_v1 = vld [vmem:[%s235_s7 + $0x8] sm:$0xff]  ;;  %650 = vmatpush3.msra.mxu0 %v296_v15  ;;  %s638_s7 = sshll.u32 (%p893_p4), %s881_s21, 4  ;;  %p398_p8 = scmp.lt.s32.totalorder (%p893_p4), %s397_s18, 2 }
  0x15   : > { %v249_v2 = vsel %vm248_vm0, %v246_v0, 0.0  ;;  %v252_v3 = vsel %vm248_vm0, %v247_v1, 0.0  ;;  %651 = vmatprep.subr.mxu0 %v295_v16  ;;  %v618_v34 = vld [vmem:[%s982_s4] ss:$0 sm:$0xff]  ;;  %s944_s10 = scalar_lea.vmem (%p893_p4), %s983_s5, %s638_s7  }
  0x16   : > { %250 = vadd.xlane.f32.xlu0 %v249_v2  ;;  %652 = vmatpush3.msra.mxu0 %v295_v16 }
  0x17   : > { %653 = vmatprep.subr.mxu0 %v294_v17 }
  0x18   : > { %654 = vmatpush3.msra.mxu0 %v294_v17 }
  0x1a   : > { %253 = vadd.xlane.f32.xlu0 %v252_v3 }
  0x9f   : > { %v251_v4 = vpop.xlane.xlu0 %250 }
  0xa0   : > { %v256_v5 = vmul.f32 0.03125, %v251_v4 }
  0xa2   : > { %v258_v6 = vsub.f32 %v246_v0, %v256_v5 }
  0xa3   : > { %v254_v7 = vpop.xlane.xlu0 %253 }
  0xa4   : > { %v257_v8 = vmul.f32 0.03125, %v254_v7  ;;  %v260_v9 = vmul.f32 %v258_v6, %v258_v6 }
  0xa6   : > { %v259_v10 = vsub.f32 %v247_v1, %v257_v8  ;;  %v262_v11 = vsel %vm248_vm0, %v260_v9, 0.0 }
  0xa7   : > { %263 = vadd.xlane.f32.xlu1 %v262_v11 }
  0xa8   : > { %v261_v12 = vmul.f32 %v259_v10, %v259_v10 }
  0xaa   : > { %v265_v13 = vsel %vm248_vm0, %v261_v12, 0.0 }
  0xab   : > { %266 = vadd.xlane.f32.xlu1 %v265_v13 }
 0x130   : > { %v264_v18 = vpop.xlane.xlu1 %263 }
 0x131   : > { %v268_v19 = vmul.f32 0.03125, %v264_v18 }
 0x133   : > { %v270_v20 = vadd.f32 1e-05, %v268_v19 }
 0x134   : > { %v267_v21 = vpop.xlane.xlu1 %266 }
 0x135   : > { %746 = vrsqrt.f32 %v270_v20  ;;  %v269_v22 = vmul.f32 0.03125, %v267_v21 }
 0x137   : > { %v271_v23 = vadd.f32 1e-05, %v269_v22 }
 0x139   : > { %748 = vrsqrt.f32 %v271_v23 }
 0x142   : > { %v747_v24 = vpop.eup %746 }
 0x143   : > { %v274_v26 = vmul.f32 %v747_v24, %v258_v6 }
 0x145   : > { %v283_v28 = vmul.f32 %v616_v25, %v274_v26 }
 0x146   : > { %v749_v29 = vpop.eup %748 }
 0x147   : > { %v275_v30 = vmul.f32 %v749_v29, %v259_v10  ;;  %v292_v31 = vadd.f32 %v617_v27, %v283_v28 }
 0x149   : > { %v284_v32 = vmul.f32 %v616_v25, %v275_v30  ;;  %655 = vmatprep.mubr.msk.f32.mxu0 %vm248_vm0, %v292_v31 }
 0x14b   : > { %v293_v33 = vadd.f32 %v617_v27, %v284_v32 }
 0x14d   : > { %656 = vmatmul.mubr.msk.f32.vlgmr.msra.gmra.mxu0 %vm248_vm0, %v293_v33 }
 0x20d   : > { %v657_v35 = vpop.f32.mrf.mxu0 }
 0x20e   : > { %v383_v36 = vadd.f32 %v657_v35, %v618_v34  ;;  %395 = sbr.rel (!%p893_p4) target bundleno = 570 (0x23a), region = 44 }
 0x20f   : > { %v377_v37 = vpop.f32.mrf.mxu0 }
 0x210   : > { %388 = vst.msk [vmem:[%s933_s6 + $0x8] sm:$0xff] %vm386_vm1, %v383_v36  ;;  %v378_v38 = vadd.f32 %v618_v34, %v377_v37 }
 0x212   : > { %387 = vst.msk [vmem:[%s933_s6] sm:$0xff] %vm386_vm1, %v378_v38 }
 0x213   : > { %s989_s18 = smov (!%p398_p8, %s397_s18), 2 }
 0x214   : > { %s623_s11 = sshll.u32 %s989_s18, 7 }
 0x215   : > { %p626_p9 = scmp.eq.s32.totalorder %s623_s11, 0 }
 0x216   : > { %s950_s12 = sshrl.u32 (!%p626_p9), %s989_s18, 1 }
 0x217   : > { %406 = sbr.rel (%p626_p9) target bundleno = 570 (0x23a), region = 48  ;;  %p627_p10 = scmp.le.s32.totalorder (!%p626_p9), %s950_s12, 0 }
 0x21c   : > { %565 = sbr.rel (%p627_p10) target bundleno = 553 (0x229), region = 124  ;;  %s806_s21 = smov (!%p627_p10), %s944_s10  }
 0x21d   : > { %s810_s26 = smov (!%p627_p10), %s933_s6   ;;  %s814_s27 = smov (!%p627_p10), 0  }
 0x21e   : > { %s818_s13 = smov (!%p627_p10), 0  }
 0x221 LB: >> { %v471_v39 = vld [vmem:[%s812_s26] sm:$0xff]  ;;  %v473_v40 = vld [vmem:[%s812_s26 + $0x8] sm:$0xff]  ;;  %s475_s14 = sadd.s32 1, %s816_s27  ;;  %s465_s13 = sadd.s32 1, %s820_s13   ;;  %s820_s13 = sphi %s818_s13, %s465_s13   ;;  %s816_s27 = sphi %s814_s27, %s815_s27   ;;  %s812_s26 = sphi %s810_s26, %s480_s26   ;;  %s808_s21 = sphi %s806_s21, %s481_s21  }
 0x222   : >> { %472 = vst [vmem:[%s808_s21] sm:$0xff] %v471_v39  ;;  %474 = vst [vmem:[%s808_s21 + $0x8] sm:$0xff] %v473_v40  ;;  %p476_p11 = scmp.ge.s32.totalorder %s475_s14, %s950_s12  ;;  %p464_p12 = scmp.ge.s32.totalorder %s465_s13, %s950_s12 }
 0x224   : >> { %s991_s14 = smov (%p476_p11, %s475_s14), 0  ;;  %467 = sbr.rel (!%p464_p12) target bundleno = 545 (0x221), region = 130 }
 0x225   : >> { %s628_s15 = sshll.u32 %s991_s14, 4  ;;  %s815_s27 = smov %s991_s14  }
 0x226   : >> { %s480_s26 = scalar_lea.vmem %s933_s6, %s628_s15 [#allocation2]   ;;  %s481_s21 = scalar_lea.vmem %s944_s10, %s628_s15  }
 0x229 PF: > { %s960_s16 = sand.u32 1, %s989_s18   ;;  %s639_s17 = sshll.u32 %s950_s12, 4 }
 0x22a   : > { %s486_s20 = scalar_lea.vmem %s933_s6, %s639_s17 [#allocation2]   ;;  %s488_s23 = scalar_lea.vmem %s944_s10, %s639_s17  }
 0x22b   : > { %p633_p13 = scmp.le.s32.totalorder %s960_s16, 0 }
 0x22c   : > { %s822_s24 = smov (!%p633_p13), %s488_s23   ;;  %s826_s28 = smov (!%p633_p13), %s486_s20  }
 0x22d   : > { %579 = sbr.rel (%p633_p13) target bundleno = 570 (0x23a), region = 135  ;;  %s830_s29 = smov (!%p633_p13), 0  }
 0x22e   : > { %s834_s30 = smov (!%p633_p13), 0  }
 0x232 LB: >> { %v498_v41 = vld [vmem:[%s828_s28] sm:$0xff]  ;;  %s500_s18 = sadd.s32 1, %s832_s29  ;;  %s492_s30 = sadd.s32 1, %s836_s30   ;;  %s836_s30 = sphi %s834_s30, %s492_s30   ;;  %s832_s29 = sphi %s830_s29, %s831_s29   ;;  %s828_s28 = sphi %s826_s28, %s505_s28   ;;  %s824_s24 = sphi %s822_s24, %s506_s24  }
 0x233   : >> { %499 = vst [vmem:[%s824_s24] sm:$0xff] %v498_v41  ;;  %p501_p0 = scmp.ge.s32.totalorder %s500_s18, %s960_s16  ;;  %p491_p1 = scmp.ge.s32.totalorder %s492_s30, %s960_s16 }
 0x235   : >> { %s993_s18 = smov (%p501_p0, %s500_s18), 0  ;;  %494 = sbr.rel (!%p491_p1) target bundleno = 562 (0x232), region = 141 }
 0x236   : >> { %s634_s6 = sshll.u32 %s993_s18, 3  ;;  %s831_s29 = smov %s993_s18  }
 0x237   : >> { %s505_s28 = scalar_lea.vmem %s486_s20, %s634_s6 [#allocation2]   ;;  %s506_s24 = scalar_lea.vmem %s488_s23, %s634_s6  }
 0x23a PF: > { %p12_p2 = scmp.ge.s32.totalorder %s883_s22, 4   ;;  %s985_s18 = smov %s800_s19 }
 0x23b   : > { %s986_s19 = smov %s891_s25  ;;  %s987_s20 = smov %s883_s22 }
 0x23c   :  { %14 = sbr.rel (!%p12_p2) target bundleno = 2 (0x2), region = 152 }

</bundles_post_ra>
